<compile_context>
chip_gen: v6e
topology: v6e:2x2x1
jax: 0.10.0
libtpu: 0.0.40
codegen_flags: <defaults>
</compile_context>

<pallas_src>
import math

import jax
import jax.numpy as jnp
from jax.experimental import pallas as pl
from jax.experimental.pallas import tpu as pltpu

_LOG_2PI = math.log(2.0 * math.pi)
_LANE = 512  # lane width of the streaming slab (multiple of 128)


def _cdiv(a, m):
    return -(-a // m)


def _round_up(a, m):
    return ((a + m - 1) // m) * m


def _chip_config():
    """Returns (num_tensorcores, max_tile_rows, vmem_limit_bytes).

    Conservative fallback (single split, 1024-row tiles) if detection fails.
    """
    gen = 0
    try:
        kind = jax.devices()[0].device_kind.lower()
    except Exception:
        kind = ""
    for g in (7, 6, 5, 4, 3, 2):
        if ("v%d" % g) in kind or ("tpu%d" % g) in kind:
            gen = g
            break
    if gen == 0:
        try:
            info = pltpu.get_tpu_info()
            name = str(getattr(info, "chip_version", "")).lower()
            for g in (7, 6, 5, 4):
                if str(g) in name:
                    gen = g
                    break
        except Exception:
            pass
    if gen >= 7:
        # v7x: 2 TCs, 3.2 TB/s HBM -> bigger tiles amortize per-step overhead.
        # 4096x512 f32 = 8 MiB/input/buffer; 2 inputs x 2 buffers = 32 MiB.
        return 2, 4096, 40 * 1024 * 1024
    # v5e / v6e (or unknown): single TensorCore; 1024-row tiles already sit
    # near the HBM roofline.
    return 1, 1024, 32 * 1024 * 1024


def vae_loss(recon_x, x, mu, log_var, z, log_scale, kldw=1.0):
    """Returns (loss.mean(), recon_loss.mean(), kld_loss.mean())."""
    B = recon_x.shape[0]
    n_real = recon_x.size  # B * C * H * W

    n_tc, max_tile_rows, vmem_limit = _chip_config()

    # ---- lane-dense slab: reshape is free when n_real % _LANE == 0 ----
    rows = _cdiv(n_real, _LANE)
    rem = rows * _LANE - n_real

    def to_slab(a):
        f = a.reshape(-1)  # native dtype, no pre-cast
        if rem:
            # Fallback: pad only the sub-lane-width remainder (< _LANE zeros).
            f = jnp.pad(f, (0, rem))
        return f.reshape(rows, _LANE)

    recon_s = to_slab(recon_x)
    x_s = to_slab(x)

    # ---- tiling ----
    n_split = n_tc if (n_tc > 1 and rows >= 16) else 1
    rps = _cdiv(rows, n_split)
    if n_split == 1 and rows <= max_tile_rows:
        # Single full-dim row block: always legal, no row masking needed.
        tile_rows = rows
    else:
        tile_rows = min(max_tile_rows, _round_up(rps, 8))
    n_tiles = _cdiv(rps, tile_rows)
    n_valid_blocks = _cdiv(rows, tile_rows)
    needs_mask = (n_split * n_tiles * tile_rows) != rows
    acc_sub = 8 if tile_rows % 8 == 0 else 1  # accumulator sublane depth

    def img_index_map(p, t):
        blk = p * n_tiles + t
        if n_split * n_tiles > n_valid_blocks:
            # Never DMA a block that starts past the array end; the in-kernel
            # mask (computed from the UNclamped index) zeroes its contribution.
            blk = jnp.minimum(blk, n_valid_blocks - 1)
        return (blk, 0)

    def kernel(recon_ref, x_ref, dsq_ref):
        p = pl.program_id(0)  # TensorCore split ("parallel")
        t = pl.program_id(1)  # reduction step   ("arbitrary")

        @pl.when(t == 0)
        def _init():
            dsq_ref[...] = jnp.zeros_like(dsq_ref)

        # Cast in-kernel so bf16 inputs stream from HBM at native width.
        diff = recon_ref[...].astype(jnp.float32) - x_ref[...].astype(jnp.float32)
        sq = diff * diff

        if needs_mask:
            # Mask invalid rows of ragged / over-covered tiles (Pallas OOB
            # block contents are unspecified).  Uses the UNclamped row start.
            row_start = (p * n_tiles + t) * tile_rows
            row_ids = jax.lax.broadcasted_iota(jnp.int32, (tile_rows, _LANE), 0)
            sq = jnp.where(row_ids < (rows - row_start), sq, 0.0)

        if acc_sub == 8:
            # Pure vreg adds down to an (8, LANE) accumulator; final sublane /
            # lane reduction is done in the wrapper.
            dsq_ref[0] = dsq_ref[0] + jnp.sum(
                sq.reshape(tile_rows // 8, 8, _LANE), axis=0)
        else:
            # Tiny single-tile path (rows not a multiple of 8).
            dsq_ref[0] = dsq_ref[0] + jnp.sum(sq, axis=0, keepdims=True)

    itemsize = jnp.dtype(recon_x.dtype).itemsize
    cost = pl.CostEstimate(
        flops=3 * n_real,
        transcendentals=0,
        bytes_accessed=2 * n_real * itemsize + n_split * acc_sub * _LANE * 4)

    dsq = pl.pallas_call(
        kernel,
        out_shape=jax.ShapeDtypeStruct((n_split, acc_sub, _LANE), jnp.float32),
        grid=(n_split, n_tiles),
        in_specs=[pl.BlockSpec((tile_rows, _LANE), img_index_map),
                  pl.BlockSpec((tile_rows, _LANE), img_index_map)],
        out_specs=pl.BlockSpec((1, acc_sub, _LANE), lambda p, t: (p, 0, 0)),
        compiler_params=pltpu.CompilerParams(
            dimension_semantics=("parallel", "arbitrary"),
            vmem_limit_bytes=vmem_limit),
        cost_estimate=cost,
    )(recon_s, x_s)

    # ---- tiny combine + finalize in plain JAX (constants hoisted) ----
    s = log_scale.astype(jnp.float32).reshape(())
    diff2_sum = jnp.sum(dsq)
    recon_sum = (-0.5 * jnp.exp(-2.0 * s) * diff2_sum
                 - n_real * (s + 0.5 * _LOG_2PI))

    # KL term is only B x D — plain JAX, no kernel traffic.
    muf = mu.astype(jnp.float32)
    lvf = log_var.astype(jnp.float32)
    zf = z.astype(jnp.float32)
    zm = zf - muf
    kl_raw_sum = jnp.sum(zm * zm * jnp.exp(-lvf) + lvf - zf * zf)
    kld_sum = -0.5 * kl_raw_sum

    inv_b = 1.0 / B
    recon_mean = recon_sum * inv_b
    kld_mean = kld_sum * inv_b
    loss_mean = (kldw * kld_sum - recon_sum) * inv_b
    return loss_mean, recon_mean, kld_mean


def _reference(recon_x, x, mu, log_var, z, log_scale, kldw=1.0):
    """Pure-JAX reference mirroring the PyTorch module."""
    B = recon_x.shape[0]
    scale = jnp.exp(log_scale.reshape(()))
    log_pxz = (-((x - recon_x) ** 2) / (2.0 * scale ** 2)
               - jnp.log(scale) - 0.5 * _LOG_2PI)
    recon_loss = log_pxz.reshape(B, -1).sum(axis=1)
    std = jnp.exp(log_var / 2.0)
    log_qzx = (-((z - mu) ** 2) / (2.0 * std ** 2)
               - jnp.log(std) - 0.5 * _LOG_2PI)
    log_pz = -0.5 * z ** 2 - 0.5 * _LOG_2PI
    kl = (log_qzx - log_pz).sum(axis=-1)
    loss = kldw * kl - recon_loss
    return loss.mean(), recon_loss.mean(), kl.mean()


if __name__ == "__main__":
    root = jax.random.PRNGKey(0)

    def check(shape, latent_dim, log_scale_val, kldw_val, key):
        k1, k2, k3, k4, k5 = jax.random.split(key, 5)
        Bb = shape[0]
        recon_x = jax.random.normal(k1, shape, dtype=jnp.float32) * 0.5
        x = jax.random.normal(k2, shape, dtype=jnp.float32) * 0.5
        mu = jax.random.normal(k3, (Bb, latent_dim), dtype=jnp.float32) * 0.1
        log_var = jax.random.normal(k4, (Bb, latent_dim), dtype=jnp.float32) * 0.1
        z = jax.random.normal(k5, (Bb, latent_dim), dtype=jnp.float32)
        log_scale = jnp.array([log_scale_val], dtype=jnp.float32)
        out = vae_loss(recon_x, x, mu, log_var, z, log_scale, kldw_val)
        jax.block_until_ready(out)
        ref = _reference(recon_x, x, mu, log_var, z, log_scale, kldw_val)
        for got, want in zip(out, ref):
            assert jnp.allclose(got, want, rtol=1e-4, atol=1e-3), (shape, got, want)

    keys = jax.random.split(root, 4)
    # nn.Parameter(torch.Tensor([0.0])) -> deterministic init at 0.0; also a
    # nonzero log_scale / non-default kldw to exercise the hoisted algebra.
    check((2, 4, 16, 16), 8, 0.0, 1.0, keys[0])
    check((2, 4, 16, 16), 8, 0.3, 0.5, keys[1])
    # Ragged: n_real not a multiple of the lane width (remainder-pad fallback).
    check((2, 3, 20, 20), 8, 0.0, 1.0, keys[2])
    # Multi-tile path (masked ragged tile on v5e/v6e, 2-way split on v7x).
    check((2, 8, 192, 192), 8, 0.0, 1.0, keys[3])

    print("KERNEL_OK")
</pallas_src>

<mosaic_0001>
module attributes {stable_mosaic.version = 11 : i64} {
  func.func @kernel(%arg0: i32, %arg1: i32, %arg2: memref<4x512xf32, #tpu.memory_space<vmem>>, %arg3: memref<4x512xf32, #tpu.memory_space<vmem>>, %arg4: memref<1x1x512xf32, #tpu.memory_space<vmem>>) attributes {dimension_semantics = [#tpu.dimension_semantics<parallel>, #tpu.dimension_semantics<arbitrary>], iteration_bounds = array<i64: 1, 1>, scalar_prefetch = 0 : i64, scratch_operands = 0 : i64, tpu.core_type = #tpu.core_type<tc>, window_params = [{transform_indices = @transform_0, window_bounds = array<i64: 4, 512>}, {transform_indices = @transform_1, window_bounds = array<i64: 4, 512>}, {transform_indices = @transform_2, window_bounds = array<i64: 1, 1, 512>}]} {
    %c0_i32 = arith.constant 0 : i32
    %0 = arith.cmpi eq, %arg1, %c0_i32 : i32
    %1 = arith.extui %0 : i1 to i32
    %c0_i32_0 = arith.constant 0 : i32
    %2 = arith.cmpi ne, %1, %c0_i32_0 : i32
    scf.if %2 {
      %cst_10 = arith.constant 0.000000e+00 : f32
      %15 = vector.broadcast %cst_10 : f32 to vector<1x1x512xf32>
      %c0_11 = arith.constant 0 : index
      %c0_12 = arith.constant 0 : index
      %c0_13 = arith.constant 0 : index
      %16 = vector.load %arg4[%c0_11, %c0_12, %c0_13] : memref<1x1x512xf32, #tpu.memory_space<vmem>>, vector<1x1x512xf32>
      tpu.vector_store %arg4[%c0_11, %c0_12, %c0_13], %15 {strides = array<i32>} : memref<1x1x512xf32, #tpu.memory_space<vmem>>, vector<1x1x512xf32>,
    } else {
    }
    %c0 = arith.constant 0 : index
    %c0_1 = arith.constant 0 : index
    %3 = vector.load %arg2[%c0, %c0_1] : memref<4x512xf32, #tpu.memory_space<vmem>>, vector<4x512xf32>
    %c0_2 = arith.constant 0 : index
    %c0_3 = arith.constant 0 : index
    %4 = vector.load %arg3[%c0_2, %c0_3] : memref<4x512xf32, #tpu.memory_space<vmem>>, vector<4x512xf32>
    %5 = arith.subf %3, %4 : vector<4x512xf32>
    %6 = arith.mulf %5, %5 : vector<4x512xf32>
    %c0_4 = arith.constant 0 : index
    %c0_5 = arith.constant 0 : index
    %c0_6 = arith.constant 0 : index
    %7 = vector.load %arg4[%c0_4, %c0_5, %c0_6] : memref<1x1x512xf32, #tpu.memory_space<vmem>>, vector<1x1x512xf32>
    %8 = vector.shape_cast %7 : vector<1x1x512xf32> to vector<1x512xf32>
    %cst = arith.constant dense<0.000000e+00> : vector<512xf32>
    %9 = vector.multi_reduction <add>, %6, %cst [0] : vector<4x512xf32> to vector<512xf32>
    %10 = vector.shape_cast %9 : vector<512xf32> to vector<1x512xf32>
    %11 = arith.addf %8, %10 : vector<1x512xf32>
    %c0_7 = arith.constant 0 : index
    %c0_8 = arith.constant 0 : index
    %c0_9 = arith.constant 0 : index
    %12 = vector.load %arg4[%c0_7, %c0_8, %c0_9] : memref<1x1x512xf32, #tpu.memory_space<vmem>>, vector<1x1x512xf32>
    %13 = vector.shape_cast %12 : vector<1x1x512xf32> to vector<1x512xf32>
    %14 = vector.shape_cast %11 : vector<1x512xf32> to vector<1x1x512xf32>
    tpu.vector_store %arg4[%c0_7, %c0_8, %c0_9], %14 {strides = array<i32>} : memref<1x1x512xf32, #tpu.memory_space<vmem>>, vector<1x1x512xf32>,
    return
  }
  func.func @transform_0(%arg0: i32, %arg1: i32) -> (i32, i32) {
    %c1_i32 = arith.constant 1 : i32
    %0 = arith.muli %arg0, %c1_i32 : i32
    %1 = arith.addi %0, %arg1 : i32
    %c0_i32 = arith.constant 0 : i32
    %c0_i32_0 = arith.constant 0 : i32
    return %1, %c0_i32 : i32, i32
  }
  func.func @transform_1(%arg0: i32, %arg1: i32) -> (i32, i32) {
    %c1_i32 = arith.constant 1 : i32
    %0 = arith.muli %arg0, %c1_i32 : i32
    %1 = arith.addi %0, %arg1 : i32
    %c0_i32 = arith.constant 0 : i32
    %c0_i32_0 = arith.constant 0 : i32
    return %1, %c0_i32 : i32, i32
  }
  func.func @transform_2(%arg0: i32, %arg1: i32) -> (i32, i32, i32) {
    %c0_i32 = arith.constant 0 : i32
    %c0_i32_0 = arith.constant 0 : i32
    %c0_i32_1 = arith.constant 0 : i32
    return %arg0, %c0_i32, %c0_i32_0 : i32, i32, i32
  }
}

</mosaic_0001>

<bundles_post_ra>
// kernel: tpu_custom_call.1
= control target key start
LH: loop header
LB: loop body
LE: loop exit
PB: predicated region body
PF: predicated region fallthrough
CT: control target
= control target key end

     0   :  { %7 = vsyncpa [#allocation3], 0  ;;  %s258_s0 = inlined_call_operand.hbm [shape: f32[4,512], index: 0, kind: input, shape index: {}]   ;;  %s259_s1 = inlined_call_operand.hbm [shape: f32[4,512], index: 1, kind: input, shape index: {}]   ;;  %s260_s2 = inlined_call_operand.hbm [shape: f32[1,1,512], index: 2, kind: output, shape index: {}]  }
   0x1   :  { %8 = vsyncpa [#allocation6], 0 }
   0x2   :  { %9 = vsyncpa [#allocation4], 0  ;;  %s221_s9 = smov [#allocation2]   ;;  %s222_s11 = smov [#allocation5]  }
   0x3   :  { %s20_s10 = sshll.u32 %s221_s9, 4  ;;  %s34_s12 = sshll.u32 %s222_s11, 4  ;;  %s21_s10 = int_to_ptr.vmem [resolvable:$true] %s20_s10  ;;  %s35_s12 = int_to_ptr.vmem [resolvable:$true] %s34_s12 }
   0x4   :  { %s163_s13 = scalar_lea.vmem %s21_s10, 256  ;;  %p168_p1 = scmp.lt.s32.totalorder %s21_s10, %s21_s10 }
   0x5   :  { %p164_p0 = scmp.ne.s32.totalorder %s21_s10, %s163_s13  ;;  %p169_p2 = scmp.lt.s32.totalorder %s163_s13, %s163_s13 }
   0x7   :  { %p170_p3 = por %p169_p2, %p168_p1 }
   0x9   :  { %p171_p4 = pnand %p170_p3, %p164_p0 }
   0xb   :  { %174 = shalt.err (!%p171_p4)
}
   0xc   :  { %23 = dma.hbm_to_vmem [thread:$0]  %s258_s0, 256, %s21_s10, [#allocation3]  }
   0xd   :  { %s183_s16 = scalar_lea.vmem %s35_s12, 256  ;;  %p188_p6 = scmp.lt.s32.totalorder %s35_s12, %s35_s12 }
   0xe   :  { %p184_p5 = scmp.ne.s32.totalorder %s35_s12, %s183_s16  ;;  %p189_p7 = scmp.lt.s32.totalorder %s183_s16, %s183_s16 }
  0x10   :  { %p190_p8 = por %p189_p7, %p188_p6 }
  0x12   :  { %p191_p9 = pnand %p190_p8, %p184_p5 }
  0x14   :  { %194 = shalt.err (!%p191_p9)
}
  0x15   :  { %37 = dma.hbm_to_vmem [thread:$0]  %s259_s1, 256, %s35_s12, [#allocation6]  }
  0x16   :  { %215 = dma.done.wait [#allocation3], 256  }
  0x17   :  { %216 = vsyncadd [#allocation3], 4294967040 }
  0x18   :  { %217 = dma.done.wait [#allocation6], 256  }
  0x19   :  { %218 = vsyncadd [#allocation6], 4294967040  ;;  %v50_v0 = vlaneseq  ;;  %v223_v2 = vmov 0.0   ;;  %v55_v3 = vld [vmem:[#allocation2] sm:$0xff]  ;;  %v56_v4 = vld [vmem:[#allocation2 + $0x8] sm:$0xff]  ;;  %vm70_vm1 = vcmask 1043456  }
  0x1a   :  { %v57_v5 = vld [vmem:[#allocation5] sm:$0xff]  ;;  %v58_v6 = vld [vmem:[#allocation5 + $0x8] sm:$0xff]  ;;  %v224_v25 = vmov 1966171168   ;;  %s225_s0 = smov [#allocation7]  }
  0x1b   :  { %vm247_vm0 = vcmp.lt.s32.totalorder %v50_v0, 512  ;;  %v59_v7 = vsub.f32 %v55_v3, %v57_v5  ;;  %v60_v8 = vsub.f32 %v56_v4, %v58_v6  ;;  %v106_v26 = vunpack.c.l.s4 %v224_v25  ;;  %s140_s1 = sshll.u32 %s225_s0, 4  ;;  %s141_s1 = int_to_ptr.vmem [resolvable:$true] %s140_s1 }
  0x1c   :  { %54 = vst.msk [vmem:[#allocation7] sm:$0xf] %vm247_vm0, %v223_v2  ;;  %v109_v36 = vshrl.u32 %v50_v0, 7  ;;  %s195_s19 = scalar_lea.vmem %s141_s1, 64  ;;  %p200_p11 = scmp.lt.s32.totalorder %s141_s1, %s141_s1 }
  0x1d   :  { %v61_v9 = vmul.f32 %v59_v7, %v59_v7  ;;  %v62_v10 = vmul.f32 %v60_v8, %v60_v8  ;;  %v107_v35 = vunpack.c.0.s8 %v106_v26  ;;  %p196_p10 = scmp.ne.s32.totalorder %s141_s1, %s195_s19  ;;  %p201_p12 = scmp.lt.s32.totalorder %s195_s19, %s195_s19 }
  0x1f   :  { %v66_v11 = vcombine.high %v61_v9, %v61_v9  ;;  %v71_v12 = vsel %vm70_vm1, %v61_v9, 0.0  ;;  %v67_v13 = vcombine.high %v62_v10, %v62_v10  ;;  %v85_v15 = vsel %vm70_vm1, %v62_v10, 0.0  ;;  %p202_p13 = por %p201_p12, %p200_p11 }
  0x20   :  { %v72_v14 = vrot.slane %v71_v12, 4  ;;  %v86_v17 = vrot.slane %v85_v15, 4  ;;  %v110_v44 = vsub.s32 %v107_v35, %v109_v36 }
  0x21   :  { %v78_v16 = vsel %vm70_vm1, %v66_v11, 0.0  ;;  %v92_v20 = vsel %vm70_vm1, %v67_v13, 0.0  ;;  %p203_p0 = pnand %p202_p13, %p196_p10 }
  0x22   :  { %v73_v18 = vadd.f32 %v72_v14, %v71_v12  ;;  %v79_v19 = vrot.slane %v78_v16, 4  ;;  %v87_v21 = vadd.f32 %v86_v17, %v85_v15  ;;  %v93_v22 = vrot.slane %v92_v20, 4 }
  0x23   :  { %v63_v51 = vld [vmem:[#allocation7] sm:$0xf] }
  0x24   :  { %v74_v23 = vrot.slane %v73_v18, 2  ;;  %v80_v24 = vadd.f32 %v79_v19, %v78_v16  ;;  %v88_v27 = vrot.slane %v87_v21, 2  ;;  %v94_v28 = vadd.f32 %v93_v22, %v92_v20 }
  0x26   :  { %v75_v29 = vadd.f32 %v74_v23, %v73_v18  ;;  %v81_v30 = vrot.slane %v80_v24, 2  ;;  %v89_v31 = vadd.f32 %v88_v27, %v87_v21  ;;  %v95_v32 = vrot.slane %v94_v28, 2 }
  0x28   :  { %v76_v33 = vrot.slane %v75_v29, 1  ;;  %v82_v34 = vadd.f32 %v81_v30, %v80_v24  ;;  %v90_v37 = vrot.slane %v89_v31, 1  ;;  %v96_v38 = vadd.f32 %v95_v32, %v94_v28 }
  0x2a   :  { %v77_v39 = vadd.f32 %v76_v33, %v75_v29  ;;  %v83_v40 = vrot.slane %v82_v34, 1  ;;  %v91_v41 = vadd.f32 %v90_v37, %v89_v31  ;;  %v97_v42 = vrot.slane %v96_v38, 1 }
  0x2c   :  { %v84_v43 = vadd.f32 %v83_v40, %v82_v34  ;;  %v98_v45 = vadd.f32 %v97_v42, %v96_v38 }
  0x2e   :  { %v103_v46 = vcombine.low %v77_v39, %v84_v43  ;;  %v104_v47 = vcombine.low %v91_v41, %v98_v45 }
  0x30   :  { %v111_v48 = vrot.slane %v103_v46, %v110_v44  ;;  %v118_v49 = vrot.slane %v104_v47, %v110_v44 }
  0x32   :  { %v119_v50 = vcombine.low %v111_v48, %v118_v49 }
  0x34   :  { %v126_v52 = vrot.slane %v119_v50, %v110_v44 }
  0x36   :  { %v128_v53 = vadd.f32 %v126_v52, %v63_v51 }
  0x38   :  { %133 = vst.msk [vmem:[#allocation7] sm:$0xf] %vm247_vm0, %v128_v53 }
  0x39   :  { %206 = shalt.err (!%p203_p0)
}
  0x3a   :  { %143 = dma.vmem_to_hbm [thread:$0]  %s141_s1, 64, %s260_s2, [#allocation4]  }
  0x3b   :  { %219 = dma.done.wait [#allocation4], 64  }
  0x3c   :  { %220 = vsyncadd [#allocation4], 4294967232 }
  0x3d   :  { %147 = vsyncpa [#allocation3], 1 }
  0x3e   :  { %148 = vsyncpa [#allocation6], 1 }
  0x3f   :  { %149 = vsyncpa [#allocation4], 1 }

</bundles_post_ra>
